<compile_context>
chip_gen: v7x
topology: tpu7x:2x2x1
jax: 0.10.0
libtpu: 0.0.40
codegen_flags: <defaults>
</compile_context>

<pallas_src>
import functools

import jax
import jax.numpy as jnp
from jax.experimental import pallas as pl
from jax.experimental.pallas import tpu as pltpu

_V_PAD_GRAN = 128   # pad the vocab / contraction dim to a full lane group
_CHUNK = 256        # rows per in-kernel sub-block (keeps counts in vregs)


def _round_up(x, m):
    return ((x + m - 1) // m) * m


def _card_embedding_kernel(x_ref, table_ref, out_ref):
    # x_ref    : (TB, C)   int32  card indices; -1 (or anything outside [0,52))
    #                             contributes nothing.
    # table_ref: (Vp, Dp)  f32    fused card+rank+suit table, zero padding rows.
    # out_ref  : (TB, Dp)  f32    per-row sum of embeddings.
    tb, num_cards = x_ref.shape
    vpad = table_ref.shape[0]
    table = table_ref[...]                                  # loaded once per tile

    chunk = min(_CHUNK, tb)
    n_chunks = tb // chunk
    # Hoisted once: lane iota used by every one-hot compare.
    iota_v = jax.lax.broadcasted_iota(jnp.int32, (chunk, vpad), 1)

    def do_chunk(r0):
        x = x_ref[pl.ds(r0, chunk), :]                      # (chunk, C) int32
        # counts[b, v] = #cards in row b equal to v (tiny C, pure VPU adds).
        counts = (x[:, 0:1] == iota_v).astype(jnp.float32)
        for j in range(1, num_cards):                       # static, small C
            counts = counts + (x[:, j:j + 1] == iota_v).astype(jnp.float32)
        # One MXU matmul replaces gather + per-card sum.
        out_ref[pl.ds(r0, chunk), :] = jnp.dot(
            counts, table, preferred_element_type=jnp.float32)

    if n_chunks == 1:
        do_chunk(0)
    else:
        def body(c, carry):
            do_chunk(pl.multiple_of(c * chunk, chunk))
            return carry
        jax.lax.fori_loop(0, n_chunks, body, None, unroll=True)


def _choose_tile(B, num_cards, dim_pad, requested):
    """Pick a batch-tile size: VMEM-budgeted, sublane/chunk aligned, >=2 grid steps."""
    try:
        vmem_cap = int(getattr(pltpu.get_tpu_info(), "vmem_capacity_bytes", 64 << 20))
    except Exception:
        vmem_cap = 64 << 20                                 # conservative (v7x per-TC)

    tb = max(8, _round_up(int(requested), 8))

    # Double-buffered input + output blocks must fit a fraction of VMEM.
    per_row = 2 * 4 * num_cards + 2 * 4 * dim_pad
    budget = min(vmem_cap, 64 << 20) // 4
    tb = min(tb, max(8, (budget // per_row) // 8 * 8))

    # Never pad the batch to more than one tile's worth of slack.
    tb = min(tb, _round_up(B, 8))

    # Keep >= 2 grid steps when B allows: the "parallel" batch axis then spans
    # both TensorCores on v7x (harmless on single-TC v5e/v6e).
    if B > 8:
        tb = min(tb, max(8, _round_up((B + 1) // 2, 8)))

    # Kernel chunks the tile in _CHUNK-row sub-blocks; make tb divide evenly.
    if tb > _CHUNK:
        tb = (tb // _CHUNK) * _CHUNK
    return tb, vmem_cap


@functools.partial(jax.jit, static_argnames=("tile_b",))
def card_embedding(indices, card_w, rank_w, suit_w, *, tile_b=2048):
    """Pallas CardEmbedding forward.

    indices: (B, num_cards) int32 with -1 meaning 'no card'.  Returns (B, dim) f32.
    """
    B, num_cards = indices.shape
    vocab, dim = card_w.shape

    dim_pad = _round_up(dim, 128)
    vpad = _round_up(vocab, _V_PAD_GRAN)

    # --- one-time table fusion (fused/cheap under jit) -------------------
    cards = jnp.arange(vocab, dtype=jnp.int32)
    combined = (card_w + rank_w[cards // 4] + suit_w[cards % 4]).astype(jnp.float32)
    combined = jnp.pad(combined, ((0, vpad - vocab), (0, dim_pad - dim)))

    # --- batch tiling: full tiles only (pad with -1 rows, sliced off) ----
    tb, vmem_cap = _choose_tile(B, num_cards, dim_pad, tile_b)
    Bp = _round_up(B, tb)
    x = indices.astype(jnp.int32)
    if Bp != B:
        x = jnp.pad(x, ((0, Bp - B), (0, 0)), constant_values=-1)

    # Explicit VMEM budget (double-buffered in/out blocks + resident table);
    # mainly matters on v5e whose default scoped-VMEM limit is only 16 MiB.
    vmem_need = 2 * tb * num_cards * 4 + 2 * tb * dim_pad * 4 + 2 * vpad * dim_pad * 4
    vmem_limit = int(min(min(vmem_cap, 64 << 20),
                         max(vmem_need + (8 << 20), 32 << 20)))

    out = pl.pallas_call(
        _card_embedding_kernel,
        out_shape=jax.ShapeDtypeStruct((Bp, dim_pad), jnp.float32),
        grid=(Bp // tb,),
        in_specs=[
            pl.BlockSpec((tb, num_cards), lambda i: (i, 0)),   # index tile
            pl.BlockSpec((vpad, dim_pad), lambda i: (0, 0)),   # fused table (resident)
        ],
        out_specs=pl.BlockSpec((tb, dim_pad), lambda i: (i, 0)),
        compiler_params=pltpu.CompilerParams(
            dimension_semantics=("parallel",),
            vmem_limit_bytes=vmem_limit),
    )(x, combined)

    # Slice fuses under jit (no extra HBM round trip).  If a downstream
    # consumer can take the lane-padded layout, return `out[:B]` instead.
    return out[:B, :dim]


def card_embedding_ref(indices, card_w, rank_w, suit_w):
    """Pure-JAX reference mirroring the PyTorch forward."""
    B, num_cards = indices.shape
    x = indices.reshape(-1)
    valid = (x >= 0).astype(jnp.float32)
    x = jnp.maximum(x, 0)
    embs = card_w[x] + rank_w[x // 4] + suit_w[x % 4]
    embs = embs * valid[:, None]
    return embs.reshape(B, num_cards, -1).sum(1)


if __name__ == "__main__":
    dim = 32
    num_cards = 8

    key = jax.random.PRNGKey(0)
    k_card, k_rank, k_suit, k_idx = jax.random.split(key, 4)

    # nn.Embedding default init: N(0, 1)
    card_w = jax.random.normal(k_card, (52, dim), dtype=jnp.float32)
    rank_w = jax.random.normal(k_rank, (13, dim), dtype=jnp.float32)
    suit_w = jax.random.normal(k_suit, (4, dim), dtype=jnp.float32)

    # 1) tiny batch (single 8-row tile, padded with -1 rows)
    indices = jax.random.randint(k_idx, (2, num_cards), -1, 52, dtype=jnp.int32)
    out = jax.block_until_ready(card_embedding(indices, card_w, rank_w, suit_w))
    ref = card_embedding_ref(indices, card_w, rank_w, suit_w)
    assert out.shape == (2, dim)
    assert jnp.allclose(out, ref, atol=1e-5, rtol=1e-5), "mismatch vs reference"

    # 2) gridded / batch-padded path (B not a multiple of the tile)
    k_idx2 = jax.random.fold_in(k_idx, 1)
    indices2 = jax.random.randint(k_idx2, (20, num_cards), -1, 52, dtype=jnp.int32)
    out2 = jax.block_until_ready(
        card_embedding(indices2, card_w, rank_w, suit_w, tile_b=8))
    ref2 = card_embedding_ref(indices2, card_w, rank_w, suit_w)
    assert out2.shape == (20, dim)
    assert jnp.allclose(out2, ref2, atol=1e-5, rtol=1e-5), "mismatch vs reference (grid)"

    # 3) larger batch: exercises the in-kernel chunked (multi-sub-block) path
    k_idx3 = jax.random.fold_in(k_idx, 2)
    indices3 = jax.random.randint(k_idx3, (1200, num_cards), -1, 52, dtype=jnp.int32)
    out3 = jax.block_until_ready(card_embedding(indices3, card_w, rank_w, suit_w))
    ref3 = card_embedding_ref(indices3, card_w, rank_w, suit_w)
    assert out3.shape == (1200, dim)
    assert jnp.allclose(out3, ref3, atol=1e-5, rtol=1e-5), "mismatch vs reference (chunked)"

    print("KERNEL_OK")
</pallas_src>

<mosaic_0001>
module attributes {stable_mosaic.version = 11 : i64} {
  func.func @_card_embedding_kernel(%arg0: i32, %arg1: memref<8x8xi32, #tpu.memory_space<vmem>>, %arg2: memref<128x128xf32, #tpu.memory_space<vmem>>, %arg3: memref<8x128xf32, #tpu.memory_space<vmem>>) attributes {dimension_semantics = [#tpu.dimension_semantics<parallel>], iteration_bounds = array<i64: 1>, scalar_prefetch = 0 : i64, scratch_operands = 0 : i64, tpu.core_type = #tpu.core_type<tc>, window_params = [{transform_indices = @transform_0, window_bounds = array<i64: 8, 8>}, {pipeline_mode = #tpu.pipeline_mode<synchronous>, transform_indices = @transform_1, window_bounds = array<i64: 128, 128>}, {transform_indices = @transform_2, window_bounds = array<i64: 8, 128>}]} {
    %c0 = arith.constant 0 : index
    %c0_0 = arith.constant 0 : index
    %0 = vector.load %arg2[%c0, %c0_0] : memref<128x128xf32, #tpu.memory_space<vmem>>, vector<128x128xf32>
    %1 = tpu.iota {dimensions = array<i32: 1>} : vector<8x128xi32>
    %c0_1 = arith.constant 0 : index
    %c0_2 = arith.constant 0 : index
    %2 = vector.load %arg1[%c0_1, %c0_2] : memref<8x8xi32, #tpu.memory_space<vmem>>, vector<8x8xi32>
    %3 = vector.extract_strided_slice %2 {offsets = [0, 0], sizes = [8, 1], strides = [1, 1]} : vector<8x8xi32> to vector<8x1xi32>
    %4 = vector.broadcast %3 : vector<8x1xi32> to vector<8x128xi32>
    %5 = arith.cmpi eq, %4, %1 : vector<8x128xi32>
    %6 = arith.extui %5 : vector<8x128xi1> to vector<8x128xi32>
    %7 = arith.sitofp %6 : vector<8x128xi32> to vector<8x128xf32>
    %8 = vector.extract_strided_slice %2 {offsets = [0, 1], sizes = [8, 1], strides = [1, 1]} : vector<8x8xi32> to vector<8x1xi32>
    %9 = vector.broadcast %8 : vector<8x1xi32> to vector<8x128xi32>
    %10 = arith.cmpi eq, %9, %1 : vector<8x128xi32>
    %11 = arith.extui %10 : vector<8x128xi1> to vector<8x128xi32>
    %12 = arith.sitofp %11 : vector<8x128xi32> to vector<8x128xf32>
    %13 = arith.addf %7, %12 : vector<8x128xf32>
    %14 = vector.extract_strided_slice %2 {offsets = [0, 2], sizes = [8, 1], strides = [1, 1]} : vector<8x8xi32> to vector<8x1xi32>
    %15 = vector.broadcast %14 : vector<8x1xi32> to vector<8x128xi32>
    %16 = arith.cmpi eq, %15, %1 : vector<8x128xi32>
    %17 = arith.extui %16 : vector<8x128xi1> to vector<8x128xi32>
    %18 = arith.sitofp %17 : vector<8x128xi32> to vector<8x128xf32>
    %19 = arith.addf %13, %18 : vector<8x128xf32>
    %20 = vector.extract_strided_slice %2 {offsets = [0, 3], sizes = [8, 1], strides = [1, 1]} : vector<8x8xi32> to vector<8x1xi32>
    %21 = vector.broadcast %20 : vector<8x1xi32> to vector<8x128xi32>
    %22 = arith.cmpi eq, %21, %1 : vector<8x128xi32>
    %23 = arith.extui %22 : vector<8x128xi1> to vector<8x128xi32>
    %24 = arith.sitofp %23 : vector<8x128xi32> to vector<8x128xf32>
    %25 = arith.addf %19, %24 : vector<8x128xf32>
    %26 = vector.extract_strided_slice %2 {offsets = [0, 4], sizes = [8, 1], strides = [1, 1]} : vector<8x8xi32> to vector<8x1xi32>
    %27 = vector.broadcast %26 : vector<8x1xi32> to vector<8x128xi32>
    %28 = arith.cmpi eq, %27, %1 : vector<8x128xi32>
    %29 = arith.extui %28 : vector<8x128xi1> to vector<8x128xi32>
    %30 = arith.sitofp %29 : vector<8x128xi32> to vector<8x128xf32>
    %31 = arith.addf %25, %30 : vector<8x128xf32>
    %32 = vector.extract_strided_slice %2 {offsets = [0, 5], sizes = [8, 1], strides = [1, 1]} : vector<8x8xi32> to vector<8x1xi32>
    %33 = vector.broadcast %32 : vector<8x1xi32> to vector<8x128xi32>
    %34 = arith.cmpi eq, %33, %1 : vector<8x128xi32>
    %35 = arith.extui %34 : vector<8x128xi1> to vector<8x128xi32>
    %36 = arith.sitofp %35 : vector<8x128xi32> to vector<8x128xf32>
    %37 = arith.addf %31, %36 : vector<8x128xf32>
    %38 = vector.extract_strided_slice %2 {offsets = [0, 6], sizes = [8, 1], strides = [1, 1]} : vector<8x8xi32> to vector<8x1xi32>
    %39 = vector.broadcast %38 : vector<8x1xi32> to vector<8x128xi32>
    %40 = arith.cmpi eq, %39, %1 : vector<8x128xi32>
    %41 = arith.extui %40 : vector<8x128xi1> to vector<8x128xi32>
    %42 = arith.sitofp %41 : vector<8x128xi32> to vector<8x128xf32>
    %43 = arith.addf %37, %42 : vector<8x128xf32>
    %44 = vector.extract_strided_slice %2 {offsets = [0, 7], sizes = [8, 1], strides = [1, 1]} : vector<8x8xi32> to vector<8x1xi32>
    %45 = vector.broadcast %44 : vector<8x1xi32> to vector<8x128xi32>
    %46 = arith.cmpi eq, %45, %1 : vector<8x128xi32>
    %47 = arith.extui %46 : vector<8x128xi1> to vector<8x128xi32>
    %48 = arith.sitofp %47 : vector<8x128xi32> to vector<8x128xf32>
    %49 = arith.addf %43, %48 : vector<8x128xf32>
    %cst = arith.constant dense<0.000000e+00> : vector<8x128xf32>
    %50 = tpu.matmul %49, %0, %cst {dimension_numbers = #tpu.dot_dimension_numbers<[1], [0], [0], [1], [0, 0, 1, 1], [], []>} : vector<8x128xf32>, vector<128x128xf32>, vector<8x128xf32> -> vector<8x128xf32>
    %c0_3 = arith.constant 0 : index
    %c0_4 = arith.constant 0 : index
    %51 = vector.load %arg3[%c0_3, %c0_4] : memref<8x128xf32, #tpu.memory_space<vmem>>, vector<8x128xf32>
    tpu.vector_store %arg3[%c0_3, %c0_4], %50 {strides = array<i32>} : memref<8x128xf32, #tpu.memory_space<vmem>>, vector<8x128xf32>,
    return
  }
  func.func @transform_0(%arg0: i32) -> (i32, i32) {
    %c0_i32 = arith.constant 0 : i32
    %c0_i32_0 = arith.constant 0 : i32
    return %arg0, %c0_i32 : i32, i32
  }
  func.func @transform_1(%arg0: i32) -> (i32, i32) {
    %c0_i32 = arith.constant 0 : i32
    %c0_i32_0 = arith.constant 0 : i32
    %c0_i32_1 = arith.constant 0 : i32
    return %c0_i32, %c0_i32_0 : i32, i32
  }
  func.func @transform_2(%arg0: i32) -> (i32, i32) {
    %c0_i32 = arith.constant 0 : i32
    %c0_i32_0 = arith.constant 0 : i32
    return %arg0, %c0_i32 : i32, i32
  }
}

</mosaic_0001>

<bundles_post_ra>
// kernel: card_embedding.1
= control target key start
LH: loop header
LB: loop body
LE: loop exit
PB: predicated region body
PF: predicated region fallthrough
CT: control target
= control target key end

     0   :  { %v264_v0 = vmov 2   ;;  %v265_v1 = vmov 0   ;;  %v266_v7 = vmov 0.0|0.0   ;;  %v267_v10 = vmov 3   ;;  %s344_s0 = inlined_call_operand.vmem [shape: s32[8,8], index: 0, kind: input, shape index: {}]   ;;  %s345_s1 = inlined_call_operand.vmem [shape: f32[128,128], index: 1, kind: input, shape index: {}]   ;;  %s346_s2 = inlined_call_operand.vmem [shape: f32[8,128], index: 2, kind: output, shape index: {}]  }
   0x1   :  { %257 = vset.pattern.permute.xlu1 %v264_v0  ;;  %255 = vset.pattern.permute.xlu0 %v265_v1  ;;  %v29_v2 = vld [vmem:[%s344_s0] sm:$0xff]  ;;  %v12_v4 = vld [vmem:[%s345_s1 + $0x8] sm:$0xff]  ;;  %v13_v5 = vld [vmem:[%s345_s1 + $0x10] sm:$0xff]  ;;  %v268_v11 = vmov 1   ;;  %v269_v17 = vmov 4   ;;  %v270_v18 = vmov 5   ;;  %v27_v35 = vlaneseq }
   0x2   :  { %v11_v3 = vld [vmem:[%s345_s1] sm:$0xff]  ;;  %44 = vperm.xlu1 %257, %v29_v2   ;;  %31 = vperm.xlu0 %255, %v29_v2   ;;  %v14_v6 = vld [vmem:[%s345_s1 + $0x18] sm:$0xff]  ;;  %v16_v13 = vld [vmem:[%s345_s1 + $0x28] sm:$0xff]  ;;  %v271_v22 = vmov 6   ;;  %v272_v23 = vmov 7   ;;  %vm273_vm0 = vmmov 0  }
   0x3   :  { %220 = vmatprep.subr.bf16.mxu0 %v266_v7  ;;  %v221_v8 = vpack.c.bf16 %v12_v4, %v11_v3  ;;  %v224_v9 = vpack.c.bf16 %v14_v6, %v13_v5  ;;  %v15_v12 = vld [vmem:[%s345_s1 + $0x20] sm:$0xff]  ;;  %v17_v15 = vld [vmem:[%s345_s1 + $0x30] sm:$0xff]  ;;  %v18_v16 = vld [vmem:[%s345_s1 + $0x38] sm:$0xff]  ;;  %v274_v31 = vmov 0.0   ;;  %v28_v38 = vand.u32 127, %v27_v35 }
   0x4   :  { %v227_v14 = vpack.c.bf16 %v16_v13, %v15_v12  ;;  %v230_v19 = vpack.c.bf16 %v18_v16, %v17_v15  ;;  %v19_v20 = vld [vmem:[%s345_s1 + $0x40] sm:$0xff]  ;;  %v20_v21 = vld [vmem:[%s345_s1 + $0x48] sm:$0xff]  ;;  %v21_v25 = vld [vmem:[%s345_s1 + $0x50] sm:$0xff]  ;;  %217 = vmatprep.mubr.msk.f32.mxu0 %vm273_vm0, %v274_v31 }
   0x5   :  { %222 = vmatpush3.bf16.msra.mxu0 %v221_v8  ;;  %v233_v24 = vpack.c.bf16 %v20_v21, %v19_v20  ;;  %v22_v26 = vld [vmem:[%s345_s1 + $0x58] sm:$0xff]  ;;  %v23_v28 = vld [vmem:[%s345_s1 + $0x60] sm:$0xff]  ;;  %v24_v29 = vld [vmem:[%s345_s1 + $0x68] sm:$0xff] }
   0x6   :  { %258 = vset.pattern.permute.xlu1 %v267_v10  ;;  %256 = vset.pattern.permute.xlu0 %v268_v11  ;;  %v236_v27 = vpack.c.bf16 %v22_v26, %v21_v25  ;;  %v239_v30 = vpack.c.bf16 %v24_v29, %v23_v28  ;;  %v25_v32 = vld [vmem:[%s345_s1 + $0x70] sm:$0xff]  ;;  %v26_v33 = vld [vmem:[%s345_s1 + $0x78] sm:$0xff] }
   0x7   :  { %51 = vperm.xlu1 %258, %v29_v2   ;;  %37 = vperm.xlu0 %256, %v29_v2   ;;  %v242_v34 = vpack.c.bf16 %v26_v33, %v25_v32 }
   0x8   :  { %223 = vmatprep.subr.bf16.mxu0 %v266_v7 }
   0x9   :  { %225 = vmatpush3.bf16.msra.mxu0 %v224_v9 }
   0xa   :  { %226 = vmatprep.subr.bf16.mxu0 %v266_v7 }
   0xb   :  { %259 = vset.pattern.permute.xlu1 %v269_v17  ;;  %260 = vset.pattern.permute.xlu0 %v270_v18 }
   0xc   :  { %58 = vperm.xlu1 %259, %v29_v2   ;;  %65 = vperm.xlu0 %260, %v29_v2  }
   0xd   :  { %228 = vmatpush3.bf16.msra.mxu0 %v227_v14 }
   0xe   :  { %229 = vmatprep.subr.bf16.mxu0 %v266_v7 }
  0x10   :  { %261 = vset.pattern.permute.xlu1 %v271_v22  ;;  %263 = vset.pattern.permute.xlu0 %v272_v23 }
  0x11   :  { %72 = vperm.xlu1 %261, %v29_v2   ;;  %231 = vmatpush3.bf16.msra.mxu0 %v230_v19 }
  0x12   :  { %232 = vmatprep.subr.bf16.mxu0 %v266_v7 }
  0x15   :  { %262 = vset.pattern.permute.xlu1 %v272_v23  ;;  %234 = vmatpush3.bf16.msra.mxu0 %v233_v24 }
  0x16   :  { %79 = vperm.xlu1 %262, %v29_v2   ;;  %235 = vmatprep.subr.bf16.mxu0 %v266_v7 }
  0x19   :  { %237 = vmatpush3.bf16.msra.mxu0 %v236_v27 }
  0x1a   :  { %238 = vmatprep.subr.bf16.mxu0 %v266_v7 }
  0x1d   :  { %240 = vmatpush3.bf16.msra.mxu0 %v239_v30 }
  0x1e   :  { %241 = vmatprep.subr.bf16.mxu0 %v266_v7 }
  0x21   :  { %243 = vmatpush3.bf16.msra.mxu0 %v242_v34 }
  0x81   :  { %v45_v36 = vpop.permute.xlu1 %44  ;;  %v32_v37 = vpop.permute.xlu0 %31 }
  0x82   :  { %vm33_vm1 = vcmp.eq.s32.totalorder %v32_v37, %v28_v38  ;;  %vm46_vm2 = vcmp.eq.s32.totalorder %v45_v36, %v28_v38 }
  0x83   :  { %v160_v41 = vsel %vm33_vm1, 1.0, %v274_v31  ;;  %v162_v44 = vsel %vm46_vm2, 1.0, %v274_v31 }
  0x86   :  { %v52_v39 = vpop.permute.xlu1 %51  ;;  %v38_v40 = vpop.permute.xlu0 %37 }
  0x87   :  { %vm39_vm3 = vcmp.eq.s32.totalorder %v38_v40, %v28_v38  ;;  %vm53_vm4 = vcmp.eq.s32.totalorder %v52_v39, %v28_v38 }
  0x88   :  { %v161_v42 = vsel %vm39_vm3, 1.0, %v274_v31  ;;  %v163_v48 = vsel %vm53_vm4, 1.0, %v274_v31 }
  0x89   :  { %v42_v43 = vadd.f32 %v161_v42, %v160_v41 }
  0x8b   :  { %v49_v45 = vadd.f32 %v162_v44, %v42_v43  ;;  %v59_v46 = vpop.permute.xlu1 %58  ;;  %v66_v47 = vpop.permute.xlu0 %65 }
  0x8c   :  { %vm60_vm5 = vcmp.eq.s32.totalorder %v59_v46, %v28_v38  ;;  %vm67_vm6 = vcmp.eq.s32.totalorder %v66_v47, %v28_v38 }
  0x8d   :  { %v56_v49 = vadd.f32 %v163_v48, %v49_v45  ;;  %v164_v50 = vsel %vm60_vm5, 1.0, %v274_v31  ;;  %v165_v52 = vsel %vm67_vm6, 1.0, %v274_v31 }
  0x8f   :  { %v63_v51 = vadd.f32 %v164_v50, %v56_v49 }
  0x90   :  { %v73_v53 = vpop.permute.xlu1 %72 }
  0x91   :  { %vm74_vm7 = vcmp.eq.s32.totalorder %v73_v53, %v28_v38  ;;  %v70_v54 = vadd.f32 %v165_v52, %v63_v51 }
  0x92   :  { %v166_v55 = vsel %vm74_vm7, 1.0, %v274_v31 }
  0x93   :  { %v77_v57 = vadd.f32 %v166_v55, %v70_v54 }
  0x95   :  { %v80_v56 = vpop.permute.xlu1 %79 }
  0x96   :  { %vm81_vm8 = vcmp.eq.s32.totalorder %v80_v56, %v28_v38 }
  0x97   :  { %v167_v58 = vsel %vm81_vm8, 1.0, %v274_v31 }
  0x98   :  { %v84_v59 = vadd.f32 %v167_v58, %v77_v57 }
  0x9a   :  { %218 = vmatmul.mubr.f32.vlgmr.msra.gmra.mrb[0].mxu0 %v84_v59 }
 0x16d   :  { %v151_v60 = vpop.f32.mrb[0].mxu0 }
 0x16e   :  { %155 = vst [vmem:[%s346_s2] sm:$0xff] %v151_v60  ;;  %v219_v61 = vpop.f32.mrb[1].mxu0 }

</bundles_post_ra>
